<compile_context>
chip_gen: v7x
topology: tpu7x:2x2x1
jax: 0.10.0
libtpu: 0.0.40
codegen_flags: <defaults>
</compile_context>

<pallas_src>
import jax
import jax.numpy as jnp
from jax.experimental import pallas as pl
from jax.experimental.pallas import tpu as pltpu


def _silu(a):
    # swish / SiLU: a * sigmoid(a) = a / (1 + exp(-a)).
    # exp and the approximate reciprocal both run on the EUP slot.
    return a * pl.reciprocal(1.0 + jnp.exp(-a), approx=True)


def _embedding_block_kernel(zij_ref, rbf_ref, t12_ref, w_rbf_ref, w3_ref,
                            b_rbf_ref, b_lin_ref, o_ref):
    tile_e = zij_ref.shape[0]
    two_zpad = t12_ref.shape[0]
    zpad = two_zpad // 2

    # --- fused embedding lookup + lin(x_i) + lin(x_j): one K=256 MXU pass ----
    # onehot row e has ones at columns z_i[e] and 128 + z_j[e]; T12 holds
    # [emb @ W1 ; emb @ W2], so onehot @ T12 = W1^T x_i + W2^T x_j.
    zij = zij_ref[...]
    zi = zij[:, 0:1]
    zj = zij[:, 1:2]
    ids = jax.lax.broadcasted_iota(jnp.int32, (tile_e, two_zpad), 1)
    onehot = ((ids == zi) | (ids == zj + zpad)).astype(jnp.bfloat16)

    # --- rbf = act(lin_rbf(rbf))  (bf16 MXU operands, f32 accumulation) ------
    rbf_lin = jnp.dot(rbf_ref[...].astype(jnp.bfloat16), w_rbf_ref[...],
                      preferred_element_type=jnp.float32) + b_rbf_ref[...]
    rbf_h = _silu(rbf_lin)

    # --- out = act(W1^T x_i + W2^T x_j + W3^T rbf_h + b) ---------------------
    acc = (jnp.dot(onehot, t12_ref[...], preferred_element_type=jnp.float32)
           + jnp.dot(rbf_h.astype(jnp.bfloat16), w3_ref[...],
                     preferred_element_type=jnp.float32)
           + b_lin_ref[...])
    o_ref[...] = _silu(acc).astype(o_ref.dtype)


def _round_up(n, m):
    return ((n + m - 1) // m) * m


def embedding_block_pallas(z, rbf, idx_i, idx_j, params, *, tile_e=1024):
    """Fused DimeNet++ EmbeddingBlock forward.

    z:     (A,)   int atom types in [0, 95)
    rbf:   (E, R) float32
    idx_i: (E,)   int edge source indices
    idx_j: (E,)   int edge target indices
    params: dict with
      emb   : (95, H)   w_rbf : (R, H)   b_rbf : (H,)
      w_lin : (3H, H)   b_lin : (H,)
    returns (E, H) float32.
    """
    E, R = rbf.shape
    H = params["emb"].shape[1]
    out_dtype = rbf.dtype
    f32 = jnp.float32

    # Per-edge atom types: tiny integer gather kept in the wrapper; packed
    # into a single (E, 2) int32 array -> one DMA / one BlockSpec per tile.
    zij = jnp.stack([jnp.take(z, idx_i), jnp.take(z, idx_j)],
                    axis=-1).astype(jnp.int32)

    # Tile the edge dim (multiples of 16 for clean bf16 sublane packing).
    # Cap the tile so the grid has >= 2 steps whenever E allows it, so the
    # "parallel" grid axis can be split across v7x's two TensorCores.
    align = 16
    e_min = _round_up(E, align)
    tile_e = _round_up(max(align, int(tile_e)), align)
    if e_min >= 2 * align:
        tile_e = min(tile_e, _round_up((e_min + 1) // 2, align))
    tile_e = min(tile_e, e_min)
    e_pad = _round_up(E, tile_e)
    pad = e_pad - E
    if pad:
        zij = jnp.pad(zij, ((0, pad), (0, 0)))
        rbf = jnp.pad(rbf, ((0, pad), (0, 0)))

    # Fold W1/W2 of `lin` into the (zero-padded, 128-row) embedding table:
    #   T12 = [emb_pad @ W1 ; emb_pad @ W2]   (256, H), bf16 for the MXU.
    # Atom types are < 95 so the zero padding rows are never selected.
    zpad = 128
    emb_pad = jnp.zeros((zpad, H), f32).at[:95].set(params["emb"].astype(f32))
    w_lin = params["w_lin"].astype(f32)
    w1, w2, w3 = w_lin[:H], w_lin[H:2 * H], w_lin[2 * H:]
    t12 = jnp.concatenate([emb_pad @ w1, emb_pad @ w2],
                          axis=0).astype(jnp.bfloat16)        # (256, H)
    w3_b = w3.astype(jnp.bfloat16)                            # (H, H)
    w_rbf_b = params["w_rbf"].astype(jnp.bfloat16)            # (R, H)
    b_rbf = params["b_rbf"].reshape(1, H).astype(f32)
    b_lin = params["b_lin"].reshape(1, H).astype(f32)

    grid = (e_pad // tile_e,)

    def edge_spec(shape):
        return pl.BlockSpec(shape, lambda e: (e, 0))

    def full_spec(shape):
        return pl.BlockSpec(shape, lambda e: (0, 0))

    out = pl.pallas_call(
        _embedding_block_kernel,
        out_shape=jax.ShapeDtypeStruct((e_pad, H), out_dtype),
        grid=grid,
        in_specs=[
            edge_spec((tile_e, 2)),      # packed (z_i, z_j), int32
            edge_spec((tile_e, R)),      # rbf (lane-sparse but tiny; fine)
            full_spec((2 * zpad, H)),    # T12 = [emb@W1 ; emb@W2], bf16
            full_spec((R, H)),           # lin_rbf weight, bf16
            full_spec((H, H)),           # lin weight block for rbf_h, bf16
            full_spec((1, H)),           # lin_rbf bias, f32
            full_spec((1, H)),           # lin bias, f32
        ],
        out_specs=edge_spec((tile_e, H)),
        compiler_params=pltpu.CompilerParams(
            dimension_semantics=("parallel",),
        ),
    )(zij, rbf, t12, w_rbf_b, w3_b, b_rbf, b_lin)

    return out[:E]


def embedding_block_ref(z, rbf, idx_i, idx_j, params):
    """Pure-JAX f32 reference matching the PyTorch module (act = swish)."""
    def silu(a):
        return a / (1.0 + jnp.exp(-a))
    x = params["emb"][z]                                          # (A, H)
    rbf_h = silu(rbf @ params["w_rbf"] + params["b_rbf"])         # (E, H)
    h = jnp.concatenate([x[idx_i], x[idx_j], rbf_h], axis=-1)     # (E, 3H)
    return silu(h @ params["w_lin"] + params["b_lin"])            # (E, H)


if __name__ == "__main__":
    num_atoms, num_edges = 24, 160
    num_radial, hidden = 6, 128

    key = jax.random.PRNGKey(0)
    ks = jax.random.split(key, 9)

    z = jax.random.randint(ks[0], (num_atoms,), 1, 95, dtype=jnp.int32)
    rbf = jax.random.uniform(ks[1], (num_edges, num_radial), dtype=jnp.float32)
    idx_i = jax.random.randint(ks[2], (num_edges,), 0, num_atoms, dtype=jnp.int32)
    idx_j = jax.random.randint(ks[3], (num_edges,), 0, num_atoms, dtype=jnp.int32)

    sqrt3 = 3.0 ** 0.5
    rbf_bound = 1.0 / (num_radial ** 0.5)
    lin_bound = 1.0 / ((3 * hidden) ** 0.5)
    params = {
        "emb": jax.random.uniform(ks[4], (95, hidden), jnp.float32,
                                  -sqrt3, sqrt3),
        "w_rbf": jax.random.uniform(ks[5], (num_radial, hidden), jnp.float32,
                                    -rbf_bound, rbf_bound),
        "b_rbf": jax.random.uniform(ks[6], (hidden,), jnp.float32,
                                    -rbf_bound, rbf_bound),
        "w_lin": jax.random.uniform(ks[7], (3 * hidden, hidden), jnp.float32,
                                    -lin_bound, lin_bound),
        "b_lin": jax.random.uniform(ks[8], (hidden,), jnp.float32,
                                    -lin_bound, lin_bound),
    }

    out = embedding_block_pallas(z, rbf, idx_i, idx_j, params)
    out = jax.block_until_ready(out)

    ref = embedding_block_ref(z, rbf, idx_i, idx_j, params)
    assert out.shape == ref.shape == (num_edges, hidden)
    assert out.dtype == ref.dtype
    # Tolerance accounts for bf16 MXU operands (f32 accumulation) and the
    # approximate EUP reciprocal in SiLU vs. the f32 XLA reference.
    assert jnp.allclose(out, ref, rtol=1e-2, atol=1e-2), "mismatch vs reference"

    print("KERNEL_OK")
</pallas_src>

<mosaic_0001>
module attributes {stable_mosaic.version = 11 : i64} {
  func.func @_embedding_block_kernel(%arg0: i32, %arg1: memref<80x2xi32, #tpu.memory_space<vmem>>, %arg2: memref<80x6xf32, #tpu.memory_space<vmem>>, %arg3: memref<256x128xbf16, #tpu.memory_space<vmem>>, %arg4: memref<6x128xbf16, #tpu.memory_space<vmem>>, %arg5: memref<128x128xbf16, #tpu.memory_space<vmem>>, %arg6: memref<1x128xf32, #tpu.memory_space<vmem>>, %arg7: memref<1x128xf32, #tpu.memory_space<vmem>>, %arg8: memref<80x128xf32, #tpu.memory_space<vmem>>) attributes {dimension_semantics = [#tpu.dimension_semantics<parallel>], iteration_bounds = array<i64: 2>, scalar_prefetch = 0 : i64, scratch_operands = 0 : i64, tpu.core_type = #tpu.core_type<tc>, window_params = [{transform_indices = @transform_0, window_bounds = array<i64: 80, 2>}, {transform_indices = @transform_1, window_bounds = array<i64: 80, 6>}, {pipeline_mode = #tpu.pipeline_mode<synchronous>, transform_indices = @transform_2, window_bounds = array<i64: 256, 128>}, {pipeline_mode = #tpu.pipeline_mode<synchronous>, transform_indices = @transform_3, window_bounds = array<i64: 6, 128>}, {pipeline_mode = #tpu.pipeline_mode<synchronous>, transform_indices = @transform_4, window_bounds = array<i64: 128, 128>}, {pipeline_mode = #tpu.pipeline_mode<synchronous>, transform_indices = @transform_5, window_bounds = array<i64: 1, 128>}, {pipeline_mode = #tpu.pipeline_mode<synchronous>, transform_indices = @transform_6, window_bounds = array<i64: 1, 128>}, {transform_indices = @transform_7, window_bounds = array<i64: 80, 128>}]} {
    %c0 = arith.constant 0 : index
    %c0_0 = arith.constant 0 : index
    %0 = vector.load %arg1[%c0, %c0_0] : memref<80x2xi32, #tpu.memory_space<vmem>>, vector<80x2xi32>
    %1 = vector.extract_strided_slice %0 {offsets = [0, 0], sizes = [80, 1], strides = [1, 1]} : vector<80x2xi32> to vector<80x1xi32>
    %2 = vector.extract_strided_slice %0 {offsets = [0, 1], sizes = [80, 1], strides = [1, 1]} : vector<80x2xi32> to vector<80x1xi32>
    %3 = tpu.iota {dimensions = array<i32: 1>} : vector<80x256xi32>
    %4 = vector.broadcast %1 : vector<80x1xi32> to vector<80x256xi32>
    %5 = arith.cmpi eq, %3, %4 : vector<80x256xi32>
    %c128_i32 = arith.constant 128 : i32
    %6 = vector.broadcast %c128_i32 : i32 to vector<80x1xi32>
    %7 = arith.addi %2, %6 : vector<80x1xi32>
    %8 = vector.broadcast %7 : vector<80x1xi32> to vector<80x256xi32>
    %9 = arith.cmpi eq, %3, %8 : vector<80x256xi32>
    %10 = arith.ori %5, %9 : vector<80x256xi1>
    %11 = arith.extui %10 : vector<80x256xi1> to vector<80x256xi32>
    %12 = arith.sitofp %11 : vector<80x256xi32> to vector<80x256xf32>
    %13 = arith.truncf %12 : vector<80x256xf32> to vector<80x256xbf16>
    %c0_1 = arith.constant 0 : index
    %c0_2 = arith.constant 0 : index
    %14 = vector.load %arg2[%c0_1, %c0_2] : memref<80x6xf32, #tpu.memory_space<vmem>>, vector<80x6xf32>
    %15 = arith.truncf %14 : vector<80x6xf32> to vector<80x6xbf16>
    %c0_3 = arith.constant 0 : index
    %c0_4 = arith.constant 0 : index
    %16 = vector.load %arg4[%c0_3, %c0_4] : memref<6x128xbf16, #tpu.memory_space<vmem>>, vector<6x128xbf16>
    %cst = arith.constant dense<0.000000e+00> : vector<80x128xf32>
    %17 = tpu.matmul %15, %16, %cst {dimension_numbers = #tpu.dot_dimension_numbers<[1], [0], [0], [1], [0, 0, 1, 1], [], []>} : vector<80x6xbf16>, vector<6x128xbf16>, vector<80x128xf32> -> vector<80x128xf32>
    %c0_5 = arith.constant 0 : index
    %c0_6 = arith.constant 0 : index
    %18 = vector.load %arg6[%c0_5, %c0_6] : memref<1x128xf32, #tpu.memory_space<vmem>>, vector<1x128xf32>
    %19 = vector.broadcast %18 : vector<1x128xf32> to vector<80x128xf32>
    %20 = arith.addf %17, %19 : vector<80x128xf32>
    %cst_7 = arith.constant 0.000000e+00 : f32
    %21 = vector.broadcast %cst_7 : f32 to vector<80x128xf32>
    %22 = arith.subf %21, %20 : vector<80x128xf32>
    %23 = math.exp %22 : vector<80x128xf32>
    %cst_8 = arith.constant 1.000000e+00 : f32
    %24 = vector.broadcast %cst_8 : f32 to vector<80x128xf32>
    %25 = arith.addf %24, %23 : vector<80x128xf32>
    %26 = tpu.reciprocal %25 {approx = true} : vector<80x128xf32> -> vector<80x128xf32>
    %27 = arith.mulf %20, %26 : vector<80x128xf32>
    %c0_9 = arith.constant 0 : index
    %c0_10 = arith.constant 0 : index
    %28 = vector.load %arg3[%c0_9, %c0_10] : memref<256x128xbf16, #tpu.memory_space<vmem>>, vector<256x128xbf16>
    %cst_11 = arith.constant dense<0.000000e+00> : vector<80x128xf32>
    %29 = tpu.matmul %13, %28, %cst_11 {dimension_numbers = #tpu.dot_dimension_numbers<[1], [0], [0], [1], [0, 0, 1, 1], [], []>} : vector<80x256xbf16>, vector<256x128xbf16>, vector<80x128xf32> -> vector<80x128xf32>
    %30 = arith.truncf %27 : vector<80x128xf32> to vector<80x128xbf16>
    %c0_12 = arith.constant 0 : index
    %c0_13 = arith.constant 0 : index
    %31 = vector.load %arg5[%c0_12, %c0_13] : memref<128x128xbf16, #tpu.memory_space<vmem>>, vector<128x128xbf16>
    %cst_14 = arith.constant dense<0.000000e+00> : vector<80x128xf32>
    %32 = tpu.matmul %30, %31, %cst_14 {dimension_numbers = #tpu.dot_dimension_numbers<[1], [0], [0], [1], [0, 0, 1, 1], [], []>} : vector<80x128xbf16>, vector<128x128xbf16>, vector<80x128xf32> -> vector<80x128xf32>
    %33 = arith.addf %29, %32 : vector<80x128xf32>
    %c0_15 = arith.constant 0 : index
    %c0_16 = arith.constant 0 : index
    %34 = vector.load %arg7[%c0_15, %c0_16] : memref<1x128xf32, #tpu.memory_space<vmem>>, vector<1x128xf32>
    %35 = vector.broadcast %34 : vector<1x128xf32> to vector<80x128xf32>
    %36 = arith.addf %33, %35 : vector<80x128xf32>
    %cst_17 = arith.constant 0.000000e+00 : f32
    %37 = vector.broadcast %cst_17 : f32 to vector<80x128xf32>
    %38 = arith.subf %37, %36 : vector<80x128xf32>
    %39 = math.exp %38 : vector<80x128xf32>
    %cst_18 = arith.constant 1.000000e+00 : f32
    %40 = vector.broadcast %cst_18 : f32 to vector<80x128xf32>
    %41 = arith.addf %40, %39 : vector<80x128xf32>
    %42 = tpu.reciprocal %41 {approx = true} : vector<80x128xf32> -> vector<80x128xf32>
    %43 = arith.mulf %36, %42 : vector<80x128xf32>
    %c0_19 = arith.constant 0 : index
    %c0_20 = arith.constant 0 : index
    %44 = vector.load %arg8[%c0_19, %c0_20] : memref<80x128xf32, #tpu.memory_space<vmem>>, vector<80x128xf32>
    tpu.vector_store %arg8[%c0_19, %c0_20], %43 {strides = array<i32>} : memref<80x128xf32, #tpu.memory_space<vmem>>, vector<80x128xf32>,
    return
  }
  func.func @transform_0(%arg0: i32) -> (i32, i32) {
    %c0_i32 = arith.constant 0 : i32
    %c0_i32_0 = arith.constant 0 : i32
    return %arg0, %c0_i32 : i32, i32
  }
  func.func @transform_1(%arg0: i32) -> (i32, i32) {
    %c0_i32 = arith.constant 0 : i32
    %c0_i32_0 = arith.constant 0 : i32
    return %arg0, %c0_i32 : i32, i32
  }
  func.func @transform_2(%arg0: i32) -> (i32, i32) {
    %c0_i32 = arith.constant 0 : i32
    %c0_i32_0 = arith.constant 0 : i32
    %c0_i32_1 = arith.constant 0 : i32
    return %c0_i32, %c0_i32_0 : i32, i32
  }
  func.func @transform_3(%arg0: i32) -> (i32, i32) {
    %c0_i32 = arith.constant 0 : i32
    %c0_i32_0 = arith.constant 0 : i32
    %c0_i32_1 = arith.constant 0 : i32
    return %c0_i32, %c0_i32_0 : i32, i32
  }
  func.func @transform_4(%arg0: i32) -> (i32, i32) {
    %c0_i32 = arith.constant 0 : i32
    %c0_i32_0 = arith.constant 0 : i32
    %c0_i32_1 = arith.constant 0 : i32
    return %c0_i32, %c0_i32_0 : i32, i32
  }
  func.func @transform_5(%arg0: i32) -> (i32, i32) {
    %c0_i32 = arith.constant 0 : i32
    %c0_i32_0 = arith.constant 0 : i32
    %c0_i32_1 = arith.constant 0 : i32
    return %c0_i32, %c0_i32_0 : i32, i32
  }
  func.func @transform_6(%arg0: i32) -> (i32, i32) {
    %c0_i32 = arith.constant 0 : i32
    %c0_i32_0 = arith.constant 0 : i32
    %c0_i32_1 = arith.constant 0 : i32
    return %c0_i32, %c0_i32_0 : i32, i32
  }
  func.func @transform_7(%arg0: i32) -> (i32, i32) {
    %c0_i32 = arith.constant 0 : i32
    %c0_i32_0 = arith.constant 0 : i32
    return %arg0, %c0_i32 : i32, i32
  }
}

</mosaic_0001>

<bundles_post_ra>
// kernel: tpu_custom_call.1
= control target key start
LH: loop header
LB: loop body
LE: loop exit
PB: predicated region body
PF: predicated region fallthrough
CT: control target
= control target key end

     0   :  { %12 = vsyncpa [#allocation3], 0  ;;  %s2121_s0 = inlined_call_operand.vmem [shape: s32[160,2], index: 0, kind: input, shape index: {}]   ;;  %s2122_s1 = inlined_call_operand.vmem [shape: f32[160,6], index: 1, kind: input, shape index: {}]   ;;  %s2123_s2 = inlined_call_operand.vmem [shape: bf16[256,128], index: 2, kind: input, shape index: {}]   ;;  %s2124_s3 = inlined_call_operand.vmem [shape: bf16[6,128], index: 3, kind: input, shape index: {}]   ;;  %s2125_s4 = inlined_call_operand.vmem [shape: bf16[128,128], index: 4, kind: input, shape index: {}]   ;;  %s2126_s5 = inlined_call_operand.vmem [shape: f32[1,128], index: 5, kind: input, shape index: {}]   ;;  %s2127_s6 = inlined_call_operand.vmem [shape: f32[1,128], index: 6, kind: input, shape index: {}]   ;;  %s2128_s7 = inlined_call_operand.hbm [shape: f32[160,128], index: 7, kind: output, shape index: {}]  }
   0x1   :  { %14 = vsyncpa [#allocation3 + $0x1], 0  ;;  %s1673_s24 = smov 0   ;;  %s1675_s25 = smov 0  }
   0x2   :  { %s1677_s26 = smov 0   ;;  %s1679_s27 = smov 0  }
   0x3 LB: > { %s1694_s28 = sadd.s32 4294967295, %s1623_s27   ;;  %s1190_s29 = sadd.s32 4294967294, %s1623_s27   ;;  %s1623_s27 = sphi %s1679_s27, %s2143_s27   ;;  %s1619_s26 = sphi %s1677_s26, %s2142_s26   ;;  %s1615_s25 = sphi %s1675_s25, %s2141_s25   ;;  %s1611_s24 = sphi %s1673_s24, %s2140_s24  }
   0x4   : > { %s1698_s30 = sadd.s32 1, %s1623_s27   ;;  %s184_s8 = sadd.s32 1, %s1619_s26 }
   0x5   : > { %s181_s9 = ssub.s32 %s1623_s27, %s1698_s30  ;;  %p194_p0 = scmp.ne.s32.totalorder %s1619_s26, %s1615_s25 }
   0x6   : > { %p182_p1 = scmp.eq.s32.totalorder %s181_s9, 0  ;;  %p195_p2 = scmp.eq.s32.totalorder %s1694_s28, 1 }
   0x7   : > { %p200_p3 = scmp.ne.s32.totalorder %s1615_s25, %s1611_s24  ;;  %p201_p4 = scmp.eq.s32.totalorder %s1190_s29, 1 }
   0x8   : > { %s1709_s10 = scalar_select %p182_p1, %s1619_s26, %s184_s8  }
   0x9   : > { %p1711_p5 = por %p195_p2, %p194_p0  ;;  %p1715_p6 = por %p201_p4, %p200_p3 }
   0xa   : > { %p1193_p7 = scmp.ge.s32.totalorder %s1623_s27, 1  ;;  %p252_p8 = scmp.lt.s32.totalorder %s1623_s27, 3 }
   0xc   : > { %p253_p9 = pnand %p1193_p7, %p252_p8 }
   0xd   : > { %v511_v0 = vld [vmem:[%s2124_s3] sm:$0x7] (!%p253_p9)  ;;  %vm535_vm0 = vcmask (!%p253_p9), 1042432   ;;  %s289_s15 = smul.u32 (!%p253_p9), 10, %s1694_s28  ;;  %v1625_v1 = vmov (!%p253_p9), 0.0   ;;  %vm2129_vm1 = vmmov (!%p253_p9), 0  }
   0xe   : > { %256 = sbr.rel (%p253_p9) target bundleno = 570 (0x23a), region = 48  ;;  %1336 = vmatprep.subr.bf16.mxu0 (!%p253_p9), %v1625_v1  ;;  %v537_v2 = vsel (!%p253_p9), %vm535_vm0, %v511_v0, 0  ;;  %1394 = vmatprep.subr.bf16.mxu1 (!%p253_p9), %v1625_v1  ;;  %v1457_v3 = vld [vmem:[%s2123_s2 + $0x40] sm:$0xff] (!%p253_p9)   ;;  %v1627_v4 = vmov (!%p253_p9), 0   ;;  %vm519_vm2 = vcmask (!%p253_p9), 48128   ;;  %v1459_v14 = vld [vmem:[%s2123_s2 + $0x48] sm:$0xff] (!%p253_p9)   ;;  %v313_v0 = vlaneseq (!%p253_p9) }
   0xf   : > { %1337 = vmatpush3.bf16.msra.mxu0 (!%p253_p9), %v537_v2  ;;  %1395 = vmatpush3.bf16.msra.mxu1 (!%p253_p9), %v537_v2  ;;  %p290_p10 = scmp.lt.s32.totalorder (!%p253_p9), %s289_s15, 19  ;;  %v1458_v11 = vld [vmem:[%s2123_s2] sm:$0xff] (!%p253_p9)   ;;  %v1460_v19 = vld [vmem:[%s2123_s2 + $0x8] sm:$0xff] (!%p253_p9)   ;;  %v1461_v20 = vld [vmem:[%s2123_s2 + $0x50] sm:$0xff] (!%p253_p9)   ;;  %v1628_v23 = vmov (!%p253_p9), 1   ;;  %s286_s20 = sand.u32 (!%p253_p9), 1, %s1615_s25  }
  0x10   : > { %1338 = vmatprep.mubr.msk.bf16.mxu0 (!%p253_p9), %vm2129_vm1, %v1625_v1  ;;  %1354 = vmatprep.mubr.msk.bf16.mxu1 (!%p253_p9), %vm2129_vm1, %v1625_v1  ;;  %v1462_v24 = vld [vmem:[%s2123_s2 + $0x10] sm:$0xff] (!%p253_p9)   ;;  %v1463_v29 = vld [vmem:[%s2123_s2 + $0x58] sm:$0xff] (!%p253_p9)   ;;  %v1465_v33 = vld [vmem:[%s2123_s2 + $0x60] sm:$0xff] (!%p253_p9)   ;;  %v1868_v2 = vand.u32 (!%p253_p9), 127, %v313_v0  ;;  %s1396_s22 = smul.u32 (!%p253_p9), 80, %s286_s20  ;;  %s2080_s16 = scalar_lea.sflag (!%p253_p9), [#allocation3], %s286_s20 }
  0x11   : > { %1444 = vset.pattern.permute.xlu1 (!%p253_p9), %v1627_v4  ;;  %1443 = vset.pattern.permute.xlu0 (!%p253_p9), %v1627_v4  ;;  %v1464_v31 = vld [vmem:[%s2123_s2 + $0x18] sm:$0xff] (!%p253_p9)   ;;  %v1466_v37 = vld [vmem:[%s2123_s2 + $0x20] sm:$0xff] (!%p253_p9)   ;;  %v1467_v38 = vld [vmem:[%s2123_s2 + $0x68] sm:$0xff] (!%p253_p9)   ;;  %s1270_s8 = smul.u32 (!%p253_p9), 1280, %s1694_s28  ;;  %s1630_s17 = smov (!%p253_p9), [#allocation2]  }
  0x12   : > { %1290 = vmatprep.subr.bf16.mxu0 (!%p253_p9), %v1457_v3  ;;  %1358 = vmatprep.subr.bf16.mxu1 (!%p253_p9), %v1625_v1  ;;  %v1468_v43 = vld [vmem:[%s2123_s2 + $0x28] sm:$0xff] (!%p253_p9)   ;;  %v1469_v44 = vld [vmem:[%s2123_s2 + $0x70] sm:$0xff] (!%p253_p9)   ;;  %v1471_v48 = vld [vmem:[%s2123_s2 + $0x78] sm:$0xff] (!%p253_p9)   ;;  %s2047_s23 = scalar_lea.vmem (!%p253_p9), [#allocation2], %s1396_s22 }
  0x13   : > { %v1470_v47 = vld [vmem:[%s2123_s2 + $0x30] sm:$0xff] (!%p253_p9)   ;;  %v1472_v55 = vld [vmem:[%s2123_s2 + $0x38] sm:$0xff] (!%p253_p9)   ;;  %v1473_v56 = vld [vmem:[%s2125_s4] sm:$0xff] (!%p253_p9)   ;;  %s1116_s9 = sshll.u32 (!%p253_p9), %s2047_s23, 4  ;;  %s2075_s9 = int_to_ptr.vmem [resolvable:$true] %s1116_s9 }
  0x14   : > { %v1474_v57 = vld [vmem:[%s2125_s4 + $0x8] sm:$0xff] (!%p253_p9)   ;;  %v1475_v58 = vld [vmem:[%s2125_s4 + $0x10] sm:$0xff] (!%p253_p9)   ;;  %v1476_v59 = vld [vmem:[%s2125_s4 + $0x18] sm:$0xff] (!%p253_p9)   ;;  %s1561_s28 = scalar_lea.vmem (!%p253_p9), %s2075_s9, 1280 }
  0x15   : > { %s2145_s15 = smov (!%p290_p10, %s289_s15), 19  ;;  %v1477_v60 = vld [vmem:[%s2125_s4 + $0x20] sm:$0xff]   ;;  %v1478_v61 = vld [vmem:[%s2125_s4 + $0x28] sm:$0xff]   ;;  %v1479_v62 = vld [vmem:[%s2125_s4 + $0x30] sm:$0xff]   ;;  %p1562_p11 = scmp.ne.s32.totalorder %s2075_s9, %s1561_s28 }
  0x16   : > { %s1194_s18 = sshll.u32 %s2145_s15, 3  ;;  %v1480_v63 = vld [vmem:[%s2125_s4 + $0x38] sm:$0xff]   ;;  %s2072_s15 = scalar_lea.hbm %s2128_s7, %s1270_s8 }
  0x17   : > { %s1740_s21 = scalar_lea.vmem %s2122_s1, %s1194_s18  ;;  %s1748_s29 = scalar_lea.vmem %s2121_s0, %s1194_s18 }
  0x18   : > { %v496_v5 = vld [vmem:[%s1740_s21] sm:$0xff]  ;;  %v497_v6 = vld [vmem:[%s1740_s21 + $0x8] sm:$0xff]  ;;  %v306_v12 = vld [vmem:[%s1748_s29 + $0x18] sm:$0xff]  ;;  %p1563_p12 = pnand %p1562_p11, %p1711_p5 }
  0x19   : > { %v504_v7 = vld [vmem:[%s1740_s21 + $0x40] sm:$0xff]  ;;  %v506_v8 = vpack.c.bf16 %v497_v6, %v496_v5  ;;  %v505_v9 = vld [vmem:[%s1740_s21 + $0x48] sm:$0xff]  ;;  %v498_v15 = vld [vmem:[%s1740_s21 + $0x10] sm:$0xff]  ;;  %326 = vperm.xlu1 %1444, %v306_v12   ;;  %v369_v30 = vadd.s32 128, %v306_v12  ;;  %v1871_v5 = vadd.s32 128, %v1868_v2 }
  0x1a   : > { %v510_v10 = vpack.c.bf16 %v505_v9, %v504_v7  ;;  %v303_v13 = vld [vmem:[%s1748_s29] sm:$0xff]  ;;  %v499_v16 = vld [vmem:[%s1740_s21 + $0x18] sm:$0xff]  ;;  %v304_v18 = vld [vmem:[%s1748_s29 + $0x8] sm:$0xff]  ;;  %p1564_p13 = pneg %p1563_p12 }
  0x1b   : > { %1339 = vmatmul.mubr.msk.bf16.vlgmr.msra.gmra.mrb[0].mxu0 %vm519_vm2, %v506_v8  ;;  %317 = vperm.xlu0 %1443, %v303_v13   ;;  %v366_v17 = vadd.s32 128, %v303_v13  ;;  %v507_v21 = vpack.c.bf16 %v499_v16, %v498_v15  ;;  %v305_v22 = vld [vmem:[%s1748_s29 + $0x10] sm:$0xff]  ;;  %v500_v25 = vld [vmem:[%s1740_s21 + $0x20] sm:$0xff]  ;;  %v367_v26 = vadd.s32 128, %v304_v18  ;;  %v501_v28 = vld [vmem:[%s1740_s21 + $0x28] sm:$0xff] }
  0x1c   : > { %1355 = vmatmul.mubr.msk.bf16.vlgmr.msra.gmra.mrb[0].mxu1 %vm519_vm2, %v510_v10  ;;  %1342 = vmatprep.mubr.msk.bf16.mxu0 %vm2129_vm1, %v1625_v1  ;;  %v368_v27 = vadd.s32 128, %v305_v22  ;;  %v508_v32 = vpack.c.bf16 %v501_v28, %v500_v25  ;;  %v502_v34 = vld [vmem:[%s1740_s21 + $0x30] sm:$0xff]  ;;  %v503_v35 = vld [vmem:[%s1740_s21 + $0x38] sm:$0xff]  ;;  %v307_v36 = vld [vmem:[%s1748_s29 + $0x20] sm:$0xff]  ;;  %v1629_v15 = vmov 1.0|1.0  }
  0x1d   : > { %1291 = vmatpush3.bf16.msra.mxu0 %v1458_v11  ;;  %1374 = vmatprep.mubr.msk.bf16.mxu1 %vm2129_vm1, %v1625_v1  ;;  %v308_v39 = vld [vmem:[%s1748_s29 + $0x28] sm:$0xff]  ;;  %v509_v40 = vpack.c.bf16 %v503_v35, %v502_v34  ;;  %v370_v41 = vadd.s32 128, %v307_v36  ;;  %v309_v42 = vld [vmem:[%s1748_s29 + $0x30] sm:$0xff]  ;;  %v310_v49 = vld [vmem:[%s1748_s29 + $0x38] sm:$0xff] }
  0x1e   : > { %1292 = vmatprep.subr.bf16.mxu0 %v1459_v14  ;;  %1445 = vset.pattern.permute.xlu1 %v1628_v23  ;;  %v371_v45 = vadd.s32 128, %v308_v39  ;;  %v372_v46 = vadd.s32 128, %v309_v42  ;;  %v312_v50 = vld [vmem:[%s1748_s29 + $0x48] sm:$0xff]  ;;  %v373_v51 = vadd.s32 128, %v310_v49  ;;  %v311_v52 = vld [vmem:[%s1748_s29 + $0x40] sm:$0xff]  ;;  %s1565_s29 = sshll.u32 %s1630_s17, 4  ;;  %s1566_s29 = int_to_ptr.vmem [resolvable:$false] %s1565_s29 }
  0x1f   : > { %320 = vperm.xlu0 %1443, %v304_v18   ;;  %377 = vperm.xlu1 %1445, %v366_v17   ;;  %v374_v53 = vadd.s32 128, %v311_v52  ;;  %v375_v54 = vadd.s32 128, %v312_v50  ;;  %v1946_v28 = vld [vmem:[%s2126_s5] ss:$0 sm:$0xff]  ;;  %s1567_s18 = scalar_lea.vmem %s1566_s29, 2560  ;;  %p1568_p0 = scmp.lt.s32.totalorder %s2075_s9, %s1566_s29 }
  0x20   : > { %1359 = vmatpush3.bf16.msra.mxu1 %v1473_v56  ;;  %p1569_p1 = scmp.lt.s32.totalorder %s1567_s18, %s1561_s28 }
  0x21   : > { %1293 = vmatpush3.bf16.msra.mxu0 %v1460_v19  ;;  %1360 = vmatprep.subr.bf16.mxu1 %v1625_v1 }
  0x22   : > { %1294 = vmatprep.subr.bf16.mxu0 %v1461_v20  ;;  %p1570_p2 = por %p1569_p1, %p1568_p0 }
  0x23   : > { %1343 = vmatmul.mubr.msk.bf16.gmra.mrb[4].mxu0 %vm519_vm2, %v507_v21  ;;  %1446 = vset.pattern.permute.xlu0 %v1628_v23 }
  0x24   : > { %1346 = vmatprep.mubr.msk.bf16.mxu0 %vm2129_vm1, %v1625_v1  ;;  %380 = vperm.xlu1 %1445, %v367_v26   ;;  %p1571_p3 = pnand %p1570_p2, %p1564_p13 }
  0x25   : > { %383 = vperm.xlu0 %1446, %v368_v27   ;;  %1295 = vmatpush3.bf16.msra.mxu0 %v1462_v24 }
  0x26   : > { %1296 = vmatprep.subr.bf16.mxu0 %v1463_v29  ;;  %1361 = vmatpush3.bf16.msra.mxu1 %v1474_v57 }
  0x27   : > { %1362 = vmatprep.subr.bf16.mxu1 %v1625_v1 }
  0x28   : > { %386 = vperm.xlu1 %1445, %v369_v30  }
  0x29   : > { %1447 = vset.pattern.permute.xlu0 %v1627_v4  ;;  %1297 = vmatpush3.bf16.msra.mxu0 %v1464_v31 }
  0x2a   : > { %323 = vperm.xlu0 %1447, %v305_v22   ;;  %1298 = vmatprep.subr.bf16.mxu0 %v1465_v33 }
  0x2b   : > { %1347 = vmatmul.mubr.msk.bf16.gmra.mrb[8].mxu0 %vm519_vm2, %v508_v32  ;;  %1363 = vmatpush3.bf16.msra.mxu1 %v1475_v58 }
  0x2c   : > { %1350 = vmatprep.mubr.msk.bf16.mxu0 %vm2129_vm1, %v1625_v1  ;;  %1448 = vset.pattern.permute.xlu1 %v1627_v4 }
  0x2d   : > { %329 = vperm.xlu1 %1448, %v307_v36   ;;  %1299 = vmatpush3.bf16.msra.mxu0 %v1466_v37 }
  0x2e   : > { %332 = vperm.xlu0 %1447, %v308_v39   ;;  %1300 = vmatprep.subr.bf16.mxu0 %v1467_v38 }
  0x2f   : > { %1364 = vmatprep.subr.bf16.mxu1 %v1625_v1 }
  0x30   : > { %1365 = vmatpush3.bf16.msra.mxu1 %v1476_v59 }
  0x31   : > { %1449 = vset.pattern.permute.xlu1 %v1628_v23  ;;  %1301 = vmatpush3.bf16.msra.mxu0 %v1468_v43 }
  0x32   : > { %389 = vperm.xlu1 %1449, %v370_v41   ;;  %335 = vperm.xlu0 %1447, %v309_v42  }
  0x33   : > { %1351 = vmatmul.mubr.msk.bf16.gmra.mrb[12].mxu0 %vm519_vm2, %v509_v40  ;;  %1302 = vmatprep.subr.bf16.mxu0 %v1469_v44 }
  0x34   : > { %1366 = vmatprep.subr.bf16.mxu1 %v1625_v1 }
  0x35   : > { %1303 = vmatpush3.bf16.msra.mxu0 %v1470_v47  ;;  %1367 = vmatpush3.bf16.msra.mxu1 %v1477_v60 }
  0x36   : > { %392 = vperm.xlu1 %1449, %v371_v45   ;;  %1451 = vset.pattern.permute.xlu0 %v1628_v23 }
  0x37   : > { %395 = vperm.xlu0 %1451, %v372_v46   ;;  %1304 = vmatprep.subr.bf16.mxu0 %v1471_v48 }
  0x38   : > { %1368 = vmatprep.subr.bf16.mxu1 %v1625_v1 }
  0x39   : > { %1305 = vmatpush3.bf16.msra.mxu0 %v1472_v55  ;;  %1369 = vmatpush3.bf16.msra.mxu1 %v1478_v61 }
  0x3a   : > { %1450 = vset.pattern.permute.xlu1 %v1627_v4  ;;  %1370 = vmatprep.subr.bf16.mxu1 %v1625_v1 }
  0x3b   : > { %338 = vperm.xlu1 %1450, %v310_v49   ;;  %1454 = vset.pattern.permute.xlu0 %v1627_v4 }
  0x3c   : > { %344 = vperm.xlu0 %1454, %v312_v50  }
  0x3d   : > { %1371 = vmatpush3.bf16.msra.mxu1 %v1479_v62 }
  0x3e   : > { %1372 = vmatprep.subr.bf16.mxu1 %v1625_v1 }
  0x3f   : > { %1452 = vset.pattern.permute.xlu1 %v1628_v23 }
  0x40   : > { %398 = vperm.xlu1 %1452, %v373_v51   ;;  %1456 = vset.pattern.permute.xlu0 %v1628_v23 }
  0x41   : > { %1373 = vmatpush3.bf16.msra.mxu1 %v1480_v63 }
  0x44   : > { %1453 = vset.pattern.permute.xlu1 %v1627_v4 }
  0x45   : > { %341 = vperm.xlu1 %1453, %v311_v52  }
  0x49   : > { %1455 = vset.pattern.permute.xlu1 %v1628_v23 }
  0x4a   : > { %401 = vperm.xlu1 %1455, %v374_v53  }
  0x4e   : > { %404 = vperm.xlu1 %1455, %v375_v54  }
  0x98   : > { %v327_v3 = vpop.permute.xlu1 %326 }
  0x99   : > { %vm352_vm14 = vcmp.eq.s32.totalorder %v1868_v2, %v327_v3 }
  0x9a   : > { %v318_v4 = vpop.permute.xlu0 %317 }
  0x9b   : > { %vm346_vm3 = vcmp.eq.s32.totalorder %v1868_v2, %v318_v4  ;;  %vm347_vm5 = vcmp.eq.s32.totalorder %v1871_v5, %v318_v4 }
  0x9e   : > { %v321_v6 = vpop.permute.xlu0 %320  ;;  %v378_v7 = vpop.permute.xlu1 %377 }
  0x9f   : > { %vm406_vm4 = vcmp.eq.s32.totalorder %v1868_v2, %v378_v7  ;;  %vm407_vm6 = vcmp.eq.s32.totalorder %v1871_v5, %v378_v7  ;;  %vm348_vm7 = vcmp.eq.s32.totalorder %v1868_v2, %v321_v6  ;;  %vm349_vm9 = vcmp.eq.s32.totalorder %v1871_v5, %v321_v6 }
  0xa0   : > { %vm1878_vm8 = vmor %vm346_vm3, %vm406_vm4 }
  0xa1   : > { %vm1883_vm10 = vmor %vm347_vm5, %vm407_vm6  ;;  %vm353_vm6 = vcmp.eq.s32.totalorder %v1871_v5, %v327_v3 }
  0xa3   : > { %v381_v9 = vpop.permute.xlu1 %380 }
  0xa4   : > { %v384_v10 = vpop.permute.xlu0 %383  ;;  %vm408_vm11 = vcmp.eq.s32.totalorder %v1868_v2, %v381_v9  ;;  %vm409_vm12 = vcmp.eq.s32.totalorder %v1871_v5, %v381_v9 }
  0xa5   : > { %vm1889_vm13 = vmor %vm348_vm7, %vm408_vm11  ;;  %vm410_vm2 = vcmp.eq.s32.totalorder %v1868_v2, %v384_v10  ;;  %vm411_vm3 = vcmp.eq.s32.totalorder %v1871_v5, %v384_v10 }
  0xa6   : > { %vm429_vm15 = vmor %vm349_vm9, %vm409_vm12 }
  0xa7   : > { %vm1248_vm0 = vmpackc.low %vm1889_vm13, %vm1878_vm8  ;;  %v387_v13 = vpop.permute.xlu1 %386 }
  0xa8   : > { %vm1246_vm4 = vmpackc.low %vm429_vm15, %vm1883_vm10  ;;  %vm412_vm5 = vcmp.eq.s32.totalorder %v1868_v2, %v387_v13  ;;  %vm413_vm9 = vcmp.eq.s32.totalorder %v1871_v5, %v387_v13 }
  0xa9   : > { %v324_v14 = vpop.permute.xlu0 %323  ;;  %1247 = vmatprep.mubr.msk.bf16.mxu0 %vm1246_vm4, %v1629_v15  ;;  %vm432_vm11 = vmor %vm352_vm14, %vm412_vm5 }
  0xaa   : > { %vm350_vm7 = vcmp.eq.s32.totalorder %v1868_v2, %v324_v14  ;;  %vm351_vm8 = vcmp.eq.s32.totalorder %v1871_v5, %v324_v14  ;;  %1249 = vmatmul.mubr.msk.bf16.vlgmr.msra.gmra.mrb[16].mxu0 %vm1248_vm0, %v1629_v15  ;;  %vm433_vm13 = vmor %vm353_vm6, %vm413_vm9 }
  0xab   : > { %vm430_vm10 = vmor %vm350_vm7, %vm410_vm2 }
  0xac   : > { %vm431_vm12 = vmor %vm351_vm8, %vm411_vm3  ;;  %v330_v16 = vpop.permute.xlu1 %329 }
  0xad   : > { %vm1250_vm15 = vmpackc.low %vm433_vm13, %vm431_vm12  ;;  %v333_v17 = vpop.permute.xlu0 %332  ;;  %vm354_vm1 = vcmp.eq.s32.totalorder %v1868_v2, %v330_v16  ;;  %vm355_vm14 = vcmp.eq.s32.totalorder %v1871_v5, %v330_v16 }
  0xae   : > { %1251 = vmatprep.mubr.msk.bf16.mxu0 %vm1250_vm15, %v1629_v15  ;;  %vm1252_vm4 = vmpackc.low %vm432_vm11, %vm430_vm10  ;;  %vm356_vm2 = vcmp.eq.s32.totalorder %v1868_v2, %v333_v17  ;;  %vm357_vm6 = vcmp.eq.s32.totalorder %v1871_v5, %v333_v17 }
  0xb1   : > { %v390_v18 = vpop.permute.xlu1 %389  ;;  %v336_v19 = vpop.permute.xlu0 %335 }
  0xb2   : > { %1253 = vmatmul.mubr.msk.bf16.gmra.mrb[20].mxu0 %vm1252_vm4, %v1629_v15  ;;  %vm414_vm5 = vcmp.eq.s32.totalorder %v1868_v2, %v390_v18  ;;  %vm415_vm0 = vcmp.eq.s32.totalorder %v1871_v5, %v390_v18  ;;  %vm359_vm4 = vcmp.eq.s32.totalorder %v1871_v5, %v336_v19 }
  0xb3   : > { %vm434_vm3 = vmor %vm354_vm1, %vm414_vm5  ;;  %vm358_vm1 = vcmp.eq.s32.totalorder %v1868_v2, %v336_v19 }
  0xb4   : > { %vm435_vm7 = vmor %vm355_vm14, %vm415_vm0 }
  0xb5   : > { %v393_v20 = vpop.permute.xlu1 %392 }
  0xb6   : > { %vm416_vm8 = vcmp.eq.s32.totalorder %v1868_v2, %v393_v20  ;;  %vm417_vm9 = vcmp.eq.s32.totalorder %v1871_v5, %v393_v20  ;;  %v396_v21 = vpop.permute.xlu0 %395 }
  0xb7   : > { %vm436_vm11 = vmor %vm356_vm2, %vm416_vm8  ;;  %vm418_vm15 = vcmp.eq.s32.totalorder %v1868_v2, %v396_v21  ;;  %vm419_vm5 = vcmp.eq.s32.totalorder %v1871_v5, %v396_v21 }
  0xb8   : > { %vm437_vm10 = vmor %vm357_vm6, %vm417_vm9 }
  0xb9   : > { %vm1254_vm12 = vmpackc.low %vm437_vm10, %vm435_vm7 }
  0xba   : > { %1255 = vmatprep.mubr.msk.bf16.mxu0 %vm1254_vm12, %v1629_v15  ;;  %vm1256_vm13 = vmpackc.low %vm436_vm11, %vm434_vm3  ;;  %v339_v22 = vpop.permute.xlu1 %338 }
  0xbb   : > { %1257 = vmatmul.mubr.msk.bf16.gmra.mrb[24].mxu0 %vm1256_vm13, %v1629_v15  ;;  %vm360_vm14 = vcmp.eq.s32.totalorder %v1868_v2, %v339_v22  ;;  %vm361_vm0 = vcmp.eq.s32.totalorder %v1871_v5, %v339_v22  ;;  %vm438_vm2 = vmor %vm358_vm1, %vm418_vm15  ;;  %v345_v26 = vpop.permute.xlu0 %344 }
  0xbc   : > { %vm439_vm6 = vmor %vm359_vm4, %vm419_vm5  ;;  %vm364_vm4 = vcmp.eq.s32.totalorder %v1868_v2, %v345_v26 }
  0xbf   : > { %v399_v23 = vpop.permute.xlu1 %398 }
  0xc0   : > { %vm420_vm3 = vcmp.eq.s32.totalorder %v1868_v2, %v399_v23  ;;  %vm421_vm7 = vcmp.eq.s32.totalorder %v1871_v5, %v399_v23 }
  0xc1   : > { %vm440_vm8 = vmor %vm360_vm14, %vm420_vm3  ;;  %vm365_vm14 = vcmp.eq.s32.totalorder %v1871_v5, %v345_v26 }
  0xc2   : > { %vm441_vm9 = vmor %vm361_vm0, %vm421_vm7 }
  0xc3   : > { %vm1258_vm11 = vmpackc.low %vm441_vm9, %vm439_vm6 }
  0xc4   : > { %1259 = vmatprep.mubr.msk.bf16.mxu0 %vm1258_vm11, %v1629_v15  ;;  %vm1260_vm10 = vmpackc.low %vm440_vm8, %vm438_vm2  ;;  %v342_v24 = vpop.permute.xlu1 %341  ;;  %vm2139_vm11 = vmmov 0  }
  0xc5   : > { %1261 = vmatmul.mubr.msk.bf16.gmra.mrb[28].mxu0 %vm1260_vm10, %v1629_v15  ;;  %vm362_vm12 = vcmp.eq.s32.totalorder %v1868_v2, %v342_v24  ;;  %vm363_vm1 = vcmp.eq.s32.totalorder %v1871_v5, %v342_v24 }
  0xc9   : > { %v402_v25 = vpop.permute.xlu1 %401 }
  0xca   : > { %vm422_vm13 = vcmp.eq.s32.totalorder %v1868_v2, %v402_v25  ;;  %vm423_vm15 = vcmp.eq.s32.totalorder %v1871_v5, %v402_v25 }
  0xcb   : > { %vm442_vm5 = vmor %vm362_vm12, %vm422_vm13 }
  0xcc   : > { %vm443_vm0 = vmor %vm363_vm1, %vm423_vm15 }
  0xcd   : > { %v405_v27 = vpop.permute.xlu1 %404 }
  0xce   : > { %vm424_vm2 = vcmp.eq.s32.totalorder %v1868_v2, %v405_v27  ;;  %vm425_vm6 = vcmp.eq.s32.totalorder %v1871_v5, %v405_v27 }
  0xcf   : > { %vm444_vm3 = vmor %vm364_vm4, %vm424_vm2 }
  0xd0   : > { %vm445_vm7 = vmor %vm365_vm14, %vm425_vm6 }
  0xd1   : > { %vm1262_vm8 = vmpackc.low %vm445_vm7, %vm443_vm0 }
  0xd2   : > { %vm1264_vm9 = vmpackc.low %vm444_vm3, %vm442_vm5  ;;  %1263 = vmatprep.mubr.msk.bf16.mxu0 %vm1262_vm8, %v1629_v15 }
  0xd3   : > { %1265 = vmatmul.mubr.msk.bf16.gmra.mrb[32].mxu0 %vm1264_vm9, %v1629_v15 }
  0xee   : > { %v573_v29 = vpop.f32.mrb[0].mxu0 }
  0xef   : > { %v1949_v30 = vadd.f32 %v1946_v28, %v573_v29  ;;  %v1340_v31 = vpop.f32.mrb[1].mxu0  ;;  %v605_v32 = vpop.f32.mrb[0].mxu1 }
  0xf0   : > { %v576_v33 = vpop.f32.mrb[2].mxu0  ;;  %v1952_v34 = vadd.f32 %v1946_v28, %v605_v32  ;;  %v1356_v35 = vpop.f32.mrb[1].mxu1 }
  0xf1   : > { %v612_v36 = vsub.f32 0.0, %v1949_v30  ;;  %v1956_v37 = vadd.f32 %v1946_v28, %v576_v33  ;;  %v1341_v38 = vpop.f32.mrb[3].mxu0  ;;  %v608_v39 = vpop.f32.mrb[2].mxu1 }
  0xf2   : > { %v620_v40 = vsub.f32 0.0, %v1952_v34  ;;  %v1960_v41 = vadd.f32 %v1946_v28, %v608_v39  ;;  %v1357_v42 = vpop.f32.mrb[3].mxu1 }
  0xf3   : > { %v622_v43 = vmul.f32 1.442695, %v612_v36  ;;  %v613_v44 = vsub.f32 0.0, %v1956_v37 }
  0xf4   : > { %v638_v45 = vmul.f32 1.442695, %v620_v40  ;;  %v621_v46 = vsub.f32 0.0, %v1960_v41 }
  0xf5   : > { %1481 = vpow2.f32 %v622_v43  ;;  %v624_v47 = vmul.f32 1.442695, %v613_v44 }
  0xf6   : > { %1483 = vpow2.f32 %v638_v45  ;;  %v640_v48 = vmul.f32 1.442695, %v621_v46  ;;  %v581_v49 = vpop.f32.mrb[4].mxu0 }
  0xf7   : > { %1485 = vpow2.f32 %v624_v47  ;;  %v1965_v50 = vadd.f32 %v1946_v28, %v581_v49  ;;  %v1344_v51 = vpop.f32.mrb[5].mxu0 }
  0xf8   : > { %1487 = vpow2.f32 %v640_v48  ;;  %v584_v52 = vpop.f32.mrb[6].mxu0 }
  0xf9   : > { %v614_v53 = vsub.f32 0.0, %v1965_v50  ;;  %v1969_v54 = vadd.f32 %v1946_v28, %v584_v52  ;;  %v1345_v55 = vpop.f32.mrb[7].mxu0 }
  0xfb   : > { %v626_v56 = vmul.f32 1.442695, %v614_v53  ;;  %v615_v57 = vsub.f32 0.0, %v1969_v54 }
  0xfd   : > { %1489 = vpow2.f32 %v626_v56  ;;  %v628_v58 = vmul.f32 1.442695, %v615_v57 }
  0xfe   : > { %v589_v59 = vpop.f32.mrb[8].mxu0 }
  0xff   : > { %v1482_v60 = vpop.eup %1481  ;;  %1491 = vpow2.f32 %v628_v58  ;;  %v1973_v61 = vadd.f32 %v1946_v28, %v589_v59  ;;  %v1348_v62 = vpop.f32.mrb[9].mxu0 }
 0x100   : > { %v1484_v63 = vpop.eup %1483  ;;  %v642_v0 = vadd.f32 1.0, %v1482_v60  ;;  %v592_v2 = vpop.f32.mrb[10].mxu0 }
 0x101   : > { %v1486_v3 = vpop.eup %1485  ;;  %v650_v4 = vadd.f32 1.0, %v1484_v63  ;;  %v616_v5 = vsub.f32 0.0, %v1973_v61  ;;  %v1977_v6 = vadd.f32 %v1946_v28, %v592_v2  ;;  %v1349_v7 = vpop.f32.mrb[11].mxu0 }
 0x102   : > { %v1488_v8 = vpop.eup %1487  ;;  %1493 = vrcp.f32 %v642_v0  ;;  %v643_v9 = vadd.f32 1.0, %v1486_v3 }
 0x103   : > { %1495 = vrcp.f32 %v650_v4  ;;  %v651_v10 = vadd.f32 1.0, %v1488_v8  ;;  %v630_v11 = vmul.f32 1.442695, %v616_v5  ;;  %v617_v12 = vsub.f32 0.0, %v1977_v6 }
 0x104   : > { %1497 = vrcp.f32 %v643_v9 }
 0x105   : > { %1499 = vrcp.f32 %v651_v10  ;;  %v632_v13 = vmul.f32 1.442695, %v617_v12 }
 0x106   : > { %1501 = vpow2.f32 %v630_v11  ;;  %v597_v14 = vpop.f32.mrb[12].mxu0 }
 0x107   : > { %v1490_v15 = vpop.eup %1489  ;;  %1503 = vpow2.f32 %v632_v13  ;;  %v598_v16 = vadd.f32 %v1946_v28, %v597_v14  ;;  %v1352_v17 = vpop.f32.mrb[13].mxu0 }
 0x108   : > { %v644_v18 = vadd.f32 1.0, %v1490_v15  ;;  %v600_v19 = vpop.f32.mrb[14].mxu0 }
 0x109   : > { %v1492_v20 = vpop.eup %1491  ;;  %v618_v21 = vsub.f32 0.0, %v598_v16  ;;  %v601_v22 = vadd.f32 %v1946_v28, %v600_v19  ;;  %v1353_v23 = vpop.f32.mrb[15].mxu0 }
 0x10a   : > { %1505 = vrcp.f32 %v644_v18  ;;  %v645_v24 = vadd.f32 1.0, %v1492_v20 }
 0x10b   : > { %v634_v25 = vmul.f32 1.442695, %v618_v21  ;;  %v619_v26 = vsub.f32 0.0, %v601_v22 }
 0x10c   : > { %v1494_v27 = vpop.eup %1493  ;;  %1507 = vrcp.f32 %v645_v24 }
 0x10d   : > { %v1496_v29 = vpop.eup %1495  ;;  %1509 = vpow2.f32 %v634_v25  ;;  %v636_v31 = vmul.f32 1.442695, %v619_v26  ;;  %v662_v36 = vmul.f32 %v1494_v27, %v1949_v30 }
 0x10e   : > { %v1498_v32 = vpop.eup %1497  ;;  %v670_v33 = vmul.f32 %v1496_v29, %v1952_v34  ;;  %v2007_v29 = vld [vmem:[%s2127_s6] ss:$0 sm:$0xff] }
 0x10f   : > { %v1500_v35 = vpop.eup %1499  ;;  %v663_v38 = vmul.f32 %v1498_v32, %v1956_v37  ;;  %1511 = vpow2.f32 %v636_v31 }
 0x110   : > { %v1502_v28 = vpop.eup %1501  ;;  %v671_v39 = vmul.f32 %v1500_v35, %v1960_v41 }
 0x111   : > { %v1504_v40 = vpop.eup %1503  ;;  %v704_v42 = vpack.c.bf16 %v663_v38, %v662_v36  ;;  %v646_v43 = vadd.f32 1.0, %v1502_v28 }
 0x112   : > { %v647_v44 = vadd.f32 1.0, %v1504_v40  ;;  %v708_v45 = vpack.c.bf16 %v671_v39, %v670_v33 }
 0x113   : > { %1513 = vrcp.f32 %v646_v43  ;;  %1375 = vmatmul.mubr.bf16.vlgmr.msra.gmra.mrb[4].mxu1 %v704_v42 }
 0x114   : > { %v1506_v46 = vpop.eup %1505  ;;  %1515 = vrcp.f32 %v647_v44  ;;  %1378 = vmatprep.mubr.msk.bf16.mxu1 %vm2139_vm11, %v1625_v1 }
 0x115   : > { %v664_v37 = vmul.f32 %v1506_v46, %v1965_v50 }
 0x116   : > { %v1508_v34 = vpop.eup %1507 }
 0x117   : > { %v1510_v30 = vpop.eup %1509  ;;  %v665_v47 = vmul.f32 %v1508_v34, %v1969_v54 }
 0x118   : > { %v648_v48 = vadd.f32 1.0, %v1510_v30 }
 0x119   : > { %v1512_v41 = vpop.eup %1511  ;;  %v705_v49 = vpack.c.bf16 %v665_v47, %v664_v37 }
 0x11a   : > { %1517 = vrcp.f32 %v648_v48  ;;  %v649_v51 = vadd.f32 1.0, %v1512_v41 }
 0x11b   : > { %1379 = vmatmul.mubr.bf16.gmra.mrb[8].mxu1 %v705_v49 }
 0x11c   : > { %1519 = vrcp.f32 %v649_v51  ;;  %1382 = vmatprep.mubr.msk.bf16.mxu1 %vm2139_vm11, %v1625_v1 }
 0x11d   : > { %v1514_v52 = vpop.eup %1513 }
 0x11e   : > { %v1516_v53 = vpop.eup %1515  ;;  %v666_v55 = vmul.f32 %v1514_v52, %v1973_v61 }
 0x11f   : > { %v667_v56 = vmul.f32 %v1516_v53, %v1977_v6 }
 0x121   : > { %v706_v57 = vpack.c.bf16 %v667_v56, %v666_v55 }
 0x123   : > { %1383 = vmatmul.mubr.bf16.gmra.mrb[12].mxu1 %v706_v57 }
 0x124   : > { %v1518_v50 = vpop.eup %1517  ;;  %1386 = vmatprep.mubr.msk.bf16.mxu1 %vm2139_vm11, %v1625_v1 }
 0x125   : > { %v668_v58 = vmul.f32 %v1518_v50, %v598_v16 }
 0x126   : > { %v1520_v54 = vpop.eup %1519 }
 0x127   : > { %v669_v59 = vmul.f32 %v1520_v54, %v601_v22 }
 0x129   : > { %v707_v60 = vpack.c.bf16 %v669_v59, %v668_v58 }
 0x12b   : > { %1387 = vmatmul.mubr.bf16.gmra.mrb[16].mxu1 %v707_v60 }
 0x12c   : > { %1390 = vmatprep.mubr.msk.bf16.mxu1 %vm2139_vm11, %v1625_v1 }
 0x133   : > { %1391 = vmatmul.mubr.bf16.gmra.mrb[20].mxu1 %v708_v45 }
 0x17d   : > { %v1306_v62 = vpop.f32.mrb[16].mxu0 }
 0x17e   : > { %v1307_v63 = vpop.f32.mrb[17].mxu0 }
 0x17f   : > { %v1308_v61 = vadd.f32 %v1307_v63, %v1306_v62  ;;  %v1309_v0 = vpop.f32.mrb[18].mxu0 }
 0x180   : > { %v1310_v2 = vpop.f32.mrb[19].mxu0 }
 0x181   : > { %v1311_v3 = vadd.f32 %v1310_v2, %v1309_v0 }
 0x185   : > { %v1312_v4 = vpop.f32.mrb[20].mxu0 }
 0x186   : > { %v1313_v5 = vpop.f32.mrb[21].mxu0 }
 0x187   : > { %v1314_v6 = vadd.f32 %v1313_v5, %v1312_v4  ;;  %v1315_v7 = vpop.f32.mrb[22].mxu0 }
 0x188   : > { %v1316_v8 = vpop.f32.mrb[23].mxu0 }
 0x189   : > { %v1317_v9 = vadd.f32 %v1316_v8, %v1315_v7 }
 0x18e   : > { %v1318_v10 = vpop.f32.mrb[24].mxu0 }
 0x18f   : > { %v1319_v11 = vpop.f32.mrb[25].mxu0 }
 0x190   : > { %v1320_v12 = vadd.f32 %v1319_v11, %v1318_v10  ;;  %v1321_v13 = vpop.f32.mrb[26].mxu0 }
 0x191   : > { %v1322_v14 = vpop.f32.mrb[27].mxu0 }
 0x192   : > { %v1323_v15 = vadd.f32 %v1322_v14, %v1321_v13 }
 0x198   : > { %v1324_v1 = vpop.f32.mrb[28].mxu0 }
 0x199   : > { %v1325_v16 = vpop.f32.mrb[29].mxu0 }
 0x19a   : > { %v1326_v17 = vadd.f32 %v1325_v16, %v1324_v1  ;;  %v1327_v18 = vpop.f32.mrb[30].mxu0 }
 0x19b   : > { %v1328_v19 = vpop.f32.mrb[31].mxu0 }
 0x19c   : > { %v1998_v20 = vadd.f32 %v1328_v19, %v1327_v18 }
 0x1a6   : > { %v1330_v21 = vpop.f32.mrb[32].mxu0 }
 0x1a7   : > { %v1331_v22 = vpop.f32.mrb[33].mxu0 }
 0x1a8   : > { %v2000_v23 = vadd.f32 %v1331_v22, %v1330_v21  ;;  %v1333_v24 = vpop.f32.mrb[34].mxu0 }
 0x1a9   : > { %v1334_v25 = vpop.f32.mrb[35].mxu0 }
 0x1aa   : > { %v2002_v26 = vadd.f32 %v1334_v25, %v1333_v24 }
 0x1e6   : > { %v807_v27 = vpop.f32.mrb[4].mxu1 }
 0x1e7   : > { %v977_v31 = vadd.f32 %v1308_v61, %v807_v27  ;;  %v1376_v32 = vpop.f32.mrb[5].mxu1 }
 0x1e8   : > { %v810_v33 = vpop.f32.mrb[6].mxu1 }
 0x1e9   : > { %v2010_v35 = vadd.f32 %v2007_v29, %v977_v31  ;;  %v980_v36 = vadd.f32 %v1311_v3, %v810_v33  ;;  %v1377_v38 = vpop.f32.mrb[7].mxu1 }
 0x1eb   : > { %v1032_v28 = vsub.f32 0.0, %v2010_v35  ;;  %v2014_v39 = vadd.f32 %v2007_v29, %v980_v36 }
 0x1ed   : > { %v1042_v40 = vmul.f32 1.442695, %v1032_v28  ;;  %v1033_v42 = vsub.f32 0.0, %v2014_v39 }
 0x1ee   : > { %v815_v43 = vpop.f32.mrb[8].mxu1 }
 0x1ef   : > { %1521 = vpow2.f32 %v1042_v40  ;;  %v1044_v44 = vmul.f32 1.442695, %v1033_v42  ;;  %v985_v45 = vadd.f32 %v1314_v6, %v815_v43  ;;  %v1380_v46 = vpop.f32.mrb[9].mxu1 }
 0x1f0   : > { %v818_v34 = vpop.f32.mrb[10].mxu1 }
 0x1f1   : > { %1523 = vpow2.f32 %v1044_v44  ;;  %v2018_v30 = vadd.f32 %v2007_v29, %v985_v45  ;;  %v988_v37 = vadd.f32 %v1317_v9, %v818_v34  ;;  %v1381_v47 = vpop.f32.mrb[11].mxu1 }
 0x1f3   : > { %v1034_v48 = vsub.f32 0.0, %v2018_v30  ;;  %v2022_v41 = vadd.f32 %v2007_v29, %v988_v37 }
 0x1f5   : > { %v1046_v49 = vmul.f32 1.442695, %v1034_v48  ;;  %v1035_v51 = vsub.f32 0.0, %v2022_v41 }
 0x1f6   : > { %v823_v52 = vpop.f32.mrb[12].mxu1 }
 0x1f7   : > { %1525 = vpow2.f32 %v1046_v49  ;;  %v1048_v53 = vmul.f32 1.442695, %v1035_v51  ;;  %v993_v55 = vadd.f32 %v1320_v12, %v823_v52  ;;  %v1384_v56 = vpop.f32.mrb[13].mxu1 }
 0x1f8   : > { %v826_v57 = vpop.f32.mrb[14].mxu1 }
 0x1f9   : > { %v1522_v50 = vpop.eup %1521  ;;  %1527 = vpow2.f32 %v1048_v53  ;;  %v2026_v54 = vadd.f32 %v2007_v29, %v993_v55  ;;  %v996_v58 = vadd.f32 %v1323_v15, %v826_v57  ;;  %v1385_v59 = vpop.f32.mrb[15].mxu1 }
 0x1fa   : > { %v1062_v60 = vadd.f32 1.0, %v1522_v50 }
 0x1fb   : > { %v1524_v62 = vpop.eup %1523  ;;  %v1036_v63 = vsub.f32 0.0, %v2026_v54  ;;  %v2030_v61 = vadd.f32 %v2007_v29, %v996_v58 }
 0x1fc   : > { %1529 = vrcp.f32 %v1062_v60  ;;  %v1063_v0 = vadd.f32 1.0, %v1524_v62 }
 0x1fd   : > { %v1050_v2 = vmul.f32 1.442695, %v1036_v63  ;;  %v1037_v3 = vsub.f32 0.0, %v2030_v61 }
 0x1fe   : > { %1531 = vrcp.f32 %v1063_v0  ;;  %v831_v4 = vpop.f32.mrb[16].mxu1 }
 0x1ff   : > { %1533 = vpow2.f32 %v1050_v2  ;;  %v1052_v5 = vmul.f32 1.442695, %v1037_v3  ;;  %v1001_v6 = vadd.f32 %v1326_v17, %v831_v4  ;;  %v1388_v7 = vpop.f32.mrb[17].mxu1 }
 0x200   : > { %v834_v8 = vpop.f32.mrb[18].mxu1 }
 0x201   : > { %v1526_v9 = vpop.eup %1525  ;;  %1535 = vpow2.f32 %v1052_v5  ;;  %v2035_v10 = vadd.f32 %v2007_v29, %v1001_v6  ;;  %v1004_v11 = vadd.f32 %v1998_v20, %v834_v8  ;;  %v1389_v12 = vpop.f32.mrb[19].mxu1 }
 0x202   : > { %v1064_v13 = vadd.f32 1.0, %v1526_v9 }
 0x203   : > { %v1528_v14 = vpop.eup %1527  ;;  %v1038_v15 = vsub.f32 0.0, %v2035_v10  ;;  %v2042_v1 = vadd.f32 %v2007_v29, %v1004_v11 }
 0x204   : > { %1537 = vrcp.f32 %v1064_v13  ;;  %v1065_v16 = vadd.f32 1.0, %v1528_v14 }
 0x205   : > { %v1054_v17 = vmul.f32 1.442695, %v1038_v15  ;;  %v1039_v18 = vsub.f32 0.0, %v2042_v1 }
 0x206   : > { %v1530_v19 = vpop.eup %1529  ;;  %1539 = vrcp.f32 %v1065_v16  ;;  %v839_v21 = vpop.f32.mrb[20].mxu1 }
 0x207   : > { %v1082_v20 = vmul.f32 %v1530_v19, %v2010_v35  ;;  %1541 = vpow2.f32 %v1054_v17  ;;  %v1056_v22 = vmul.f32 1.442695, %v1039_v18  ;;  %v1009_v24 = vadd.f32 %v2000_v23, %v839_v21  ;;  %v1392_v25 = vpop.f32.mrb[21].mxu1 }
 0x208   : > { %v1532_v27 = vpop.eup %1531  ;;  %v842_v31 = vpop.f32.mrb[22].mxu1 }
 0x209   : > { %v1534_v32 = vpop.eup %1533  ;;  %1092 = vst [vmem:[%s2047_s23] sm:$0xff] %v1082_v20  ;;  %v1083_v33 = vmul.f32 %v1532_v27, %v2014_v39  ;;  %1543 = vpow2.f32 %v1056_v22  ;;  %v1030_v36 = vadd.f32 %v2007_v29, %v1009_v24  ;;  %v1012_v35 = vadd.f32 %v2002_v26, %v842_v31  ;;  %v1393_v38 = vpop.f32.mrb[23].mxu1 }
 0x20a   : > { %v1066_v28 = vadd.f32 1.0, %v1534_v32 }
 0x20b   : > { %v1536_v23 = vpop.eup %1535  ;;  %1093 = vst [vmem:[%s2047_s23 + $0x8] sm:$0xff] %v1083_v33  ;;  %v1040_v40 = vsub.f32 0.0, %v1030_v36  ;;  %v1031_v42 = vadd.f32 %v2007_v29, %v1012_v35 }
 0x20c   : > { %1545 = vrcp.f32 %v1066_v28  ;;  %v1067_v43 = vadd.f32 1.0, %v1536_v23 }
 0x20d   : > { %v1058_v44 = vmul.f32 1.442695, %v1040_v40  ;;  %v1041_v45 = vsub.f32 0.0, %v1031_v42 }
 0x20e   : > { %v1538_v46 = vpop.eup %1537  ;;  %1547 = vrcp.f32 %v1067_v43 }
 0x20f   : > { %v1084_v39 = vmul.f32 %v1538_v46, %v2018_v30  ;;  %1549 = vpow2.f32 %v1058_v44  ;;  %v1060_v34 = vmul.f32 1.442695, %v1041_v45 }
 0x210   : > { %v1540_v26 = vpop.eup %1539 }
 0x211   : > { %v1542_v37 = vpop.eup %1541  ;;  %1094 = vst [vmem:[%s2047_s23 + $0x10] sm:$0xff] %v1084_v39  ;;  %v1085_v47 = vmul.f32 %v1540_v26, %v2022_v41  ;;  %1551 = vpow2.f32 %v1060_v34 }
 0x212   : > { %v1068_v29 = vadd.f32 1.0, %v1542_v37 }
 0x213   : > { %v1544_v48 = vpop.eup %1543  ;;  %1095 = vst [vmem:[%s2047_s23 + $0x18] sm:$0xff] %v1085_v47 }
 0x214   : > { %1553 = vrcp.f32 %v1068_v29  ;;  %v1069_v49 = vadd.f32 1.0, %v1544_v48 }
 0x216   : > { %v1546_v51 = vpop.eup %1545  ;;  %1555 = vrcp.f32 %v1069_v49 }
 0x217   : > { %v1086_v30 = vmul.f32 %v1546_v51, %v2026_v54 }
 0x218   : > { %v1548_v52 = vpop.eup %1547 }
 0x219   : > { %v1550_v53 = vpop.eup %1549  ;;  %1096 = vst [vmem:[%s2047_s23 + $0x20] sm:$0xff] %v1086_v30  ;;  %v1087_v41 = vmul.f32 %v1548_v52, %v2030_v61 }
 0x21a   : > { %v1070_v55 = vadd.f32 1.0, %v1550_v53 }
 0x21b   : > { %v1552_v56 = vpop.eup %1551  ;;  %1097 = vst [vmem:[%s2047_s23 + $0x28] sm:$0xff] %v1087_v41 }
 0x21c   : > { %1557 = vrcp.f32 %v1070_v55  ;;  %v1071_v57 = vadd.f32 1.0, %v1552_v56 }
 0x21e   : > { %v1554_v50 = vpop.eup %1553  ;;  %1559 = vrcp.f32 %v1071_v57 }
 0x21f   : > { %v1088_v54 = vmul.f32 %v1554_v50, %v2035_v10 }
 0x220   : > { %v1556_v58 = vpop.eup %1555 }
 0x221   : > { %1098 = vst [vmem:[%s2047_s23 + $0x30] sm:$0xff] %v1088_v54  ;;  %v1089_v59 = vmul.f32 %v1556_v58, %v2042_v1 }
 0x223   : > { %1099 = vst [vmem:[%s2047_s23 + $0x38] sm:$0xff] %v1089_v59 }
 0x226   : > { %v1558_v60 = vpop.eup %1557 }
 0x227   : > { %v1090_v62 = vmul.f32 %v1558_v60, %v1030_v36 }
 0x228   : > { %v1560_v63 = vpop.eup %1559 }
 0x229   : > { %1100 = vst [vmem:[%s2047_s23 + $0x40] sm:$0xff] %v1090_v62  ;;  %v1091_v61 = vmul.f32 %v1560_v63, %v1031_v42 }
 0x22b   : > { %1101 = vst [vmem:[%s2047_s23 + $0x48] sm:$0xff] %v1091_v61 }
 0x22c   : > { %1574 = shalt.err (!%p1571_p3)
}
 0x22d   : > { %s1575_s21 = scalar_lea.hbm %s2072_s15, 1280  ;;  %s1579_s22 = scalar_lea.hbm %s2128_s7, 2560 }
 0x22e   : > { %p1576_p4 = scmp.ne.s32.totalorder %s2072_s15, %s1575_s21  ;;  %p1580_p9 = scmp.lt.u32.totalorder %s2072_s15, %s2128_s7 }
 0x22f   : > { %p1581_p10 = scmp.lt.u32.totalorder %s1579_s22, %s1575_s21  ;;  %p1583_p12 = scmp.lt.u32.totalorder %s1575_s21, %s2072_s15 }
 0x230   : > { %p1577_p7 = pnand %p1576_p4, %p1711_p5 }
 0x231   : > { %p1582_p11 = por %p1581_p10, %p1580_p9 }
 0x232   : > { %p1578_p8 = pneg %p1577_p7 }
 0x233   : > { %p1584_p13 = por %p1583_p12, %p1582_p11 }
 0x235   : > { %p1585_p0 = pnand %p1584_p13, %p1578_p8 }
 0x237   : > { %1588 = shalt.err (!%p1585_p0)
}
 0x238   : > { %s1631_s13 = smov 128   ;;  %s1632_s14 = smov 8  }
 0x239   : > { %1397 = dma.vmem_to_hbm [thread:$0]  (%p1711_p5), %s2075_s9, 1280, %s2072_s15, %s2080_s16, %s1631_s13, %s1631_s13, %s1632_s14  }
 0x23a PF: > { %p1403_p1 = scmp.ge.s32.totalorder %s1623_s27, 2  ;;  %s1131_s28 = sand.u32 1, %s1611_s24  }
 0x23b   : > { %s1132_s17 = scalar_lea.sflag [#allocation3], %s1131_s28 }
 0x23c   : > { %p1400_p2 = pnand %p1403_p1, %p1715_p6 }
 0x23e   : > { %1606 = dma.done.wait (!%p1400_p2), %s1132_s17, 1280  }
 0x23f   : > { %1608 = vsyncadd (!%p1400_p2), %s1132_s17, 4294966016  ;;  %p17_p3 = scmp.ge.s32.totalorder %s1698_s30, 4   ;;  %s2140_s24 = smov %s1615_s25 }
 0x240   : > { %s2141_s25 = smov %s1619_s26  ;;  %s2142_s26 = smov %s1709_s10 }
 0x241   : > { %s2143_s27 = smov %s1698_s30  ;;  %19 = sbr.rel (!%p17_p3) target bundleno = 3 (0x3), region = 86 }
 0x248   :  { %1137 = vsyncpa [#allocation3], 1 }
 0x249   :  { %1139 = vsyncpa [#allocation3 + $0x1], 1 }

</bundles_post_ra>
